<compile_context>
chip_gen: v7x
topology: tpu7x:2x2x1
jax: 0.10.0
libtpu: 0.0.40
codegen_flags: <defaults>
</compile_context>

<pallas_src>
import functools

import jax
import jax.numpy as jnp
from jax.experimental import pallas as pl
from jax.experimental.pallas import tpu as pltpu

LANE = 128


# ----------------------------- Pallas kernel --------------------------------
def _gcn_fused_kernel(a_ref, x_ref, w1_ref, b1_ref, w2_ref, b2_ref,
                      w3_ref, b3_ref, o_ref, *, negative_slope):
    a = a_ref[...]                     # (Np, Np)  bf16, VMEM-resident once
    x = x_ref[...]                     # (Np, F0p) bf16

    # ---- layer 1: (Â @ X) @ W1 + b1, leaky_relu   (f_in < f_out) ----
    ax = jnp.dot(a, x, preferred_element_type=jnp.float32)
    h = jnp.dot(ax.astype(jnp.bfloat16), w1_ref[...],
                preferred_element_type=jnp.float32) + b1_ref[...]
    h = jnp.where(h >= 0.0, h, negative_slope * h)            # f32 VPU

    # ---- layer 2: Â @ (H @ W2) + b2, leaky_relu   (f_out <= f_in) ----
    hw = jnp.dot(h.astype(jnp.bfloat16), w2_ref[...],
                 preferred_element_type=jnp.float32)
    h = jnp.dot(a, hw.astype(jnp.bfloat16),
                preferred_element_type=jnp.float32) + b2_ref[...]
    h = jnp.where(h >= 0.0, h, negative_slope * h)

    # ---- layer 3: Â @ (H @ W3) + b3  (no activation) ----
    hw = jnp.dot(h.astype(jnp.bfloat16), w3_ref[...],
                 preferred_element_type=jnp.float32)
    out = jnp.dot(a, hw.astype(jnp.bfloat16),
                  preferred_element_type=jnp.float32) + b3_ref[...]

    o_ref[...] = out.astype(o_ref.dtype)


# ------------------------------ wrapper (JAX) --------------------------------
def _round_up(x, m):
    return ((x + m - 1) // m) * m


def _pad2(m, rows, cols, dtype):
    out = jnp.zeros((rows, cols), dtype)
    return out.at[:m.shape[0], :m.shape[1]].set(m.astype(dtype))


def normalized_adjacency(edge_index, num_nodes):
    """Â = D^{-1/2}(A + I_remaining)D^{-1/2}  (PyG gcn_norm semantics:
    self-loops are only added for nodes that do not already have one)."""
    src = edge_index[0]
    dst = edge_index[1]
    a = jnp.zeros((num_nodes, num_nodes), jnp.float32)
    a = a.at[dst, src].add(1.0)                       # message j -> i
    diag = jnp.diagonal(a)
    idx = jnp.arange(num_nodes)
    a = a.at[idx, idx].set(jnp.where(diag > 0, diag, 1.0))   # remaining self-loops
    deg = a.sum(axis=1)
    d_inv_sqrt = jnp.where(deg > 0, 1.0 / jnp.sqrt(deg), 0.0)
    return d_inv_sqrt[:, None] * a * d_inv_sqrt[None, :]


def glorot(key, shape):
    fan_in, fan_out = shape
    limit = jnp.sqrt(6.0 / (fan_in + fan_out))
    return jax.random.uniform(key, shape, jnp.float32, -limit, limit)


def init_gcn_params(key, num_node_features, num_classes):
    k1, k2, k3 = jax.random.split(key, 3)
    dims = [(num_node_features, 128), (128, 16), (16, num_classes)]
    params = []
    for k, (fi, fo) in zip((k1, k2, k3), dims):
        params.append((glorot(k, (fi, fo)), jnp.zeros((fo,), jnp.float32)))
    return params


def gcn_forward(params, x, edge_index, *, negative_slope=0.2):
    n, f0 = x.shape
    (w1, b1), (w2, b2), (w3, b3) = params
    f1, f2, f3 = w1.shape[1], w2.shape[1], w3.shape[1]

    a_hat = normalized_adjacency(edge_index, n)

    # Lane-dense padding: every matmul dimension rounded up to 128.
    n_p = _round_up(n, LANE)
    f0_p, f1_p, f2_p, f3_p = (_round_up(f, LANE) for f in (f0, f1, f2, f3))

    a_p = _pad2(a_hat, n_p, n_p, jnp.bfloat16)
    x_p = _pad2(x, n_p, f0_p, jnp.bfloat16)
    w1_p = _pad2(w1, f0_p, f1_p, jnp.bfloat16)
    w2_p = _pad2(w2, f1_p, f2_p, jnp.bfloat16)
    w3_p = _pad2(w3, f2_p, f3_p, jnp.bfloat16)
    b1_p = _pad2(b1.reshape(1, -1), 1, f1_p, jnp.float32)
    b2_p = _pad2(b2.reshape(1, -1), 1, f2_p, jnp.float32)
    b3_p = _pad2(b3.reshape(1, -1), 1, f3_p, jnp.float32)

    flops = 2 * n_p * (n_p * f0_p + f0_p * f1_p      # layer 1
                       + f1_p * f2_p + n_p * f2_p    # layer 2
                       + f2_p * f3_p + n_p * f3_p)   # layer 3
    in_bytes = 2 * (a_p.size + x_p.size + w1_p.size + w2_p.size + w3_p.size) \
        + 4 * (b1_p.size + b2_p.size + b3_p.size)
    out_bytes = 4 * n_p * f3_p
    bytes_accessed = in_bytes + out_bytes

    # VMEM budget: double-buffered inputs/outputs + intermediate headroom,
    # clamped to fit every chip generation's physical VMEM (v7x: 64 MiB).
    vmem_bytes = min(max(2 * (in_bytes + out_bytes) + (8 << 20), 32 << 20),
                     60 << 20)

    def full_spec(shape):
        nd = len(shape)
        return pl.BlockSpec(shape, lambda i, _nd=nd: (0,) * _nd)

    kern = functools.partial(_gcn_fused_kernel, negative_slope=negative_slope)

    out_p = pl.pallas_call(
        kern,
        out_shape=jax.ShapeDtypeStruct((n_p, f3_p), jnp.float32),
        grid=(1,),
        in_specs=[
            full_spec(a_p.shape),   # Â
            full_spec(x_p.shape),   # X
            full_spec(w1_p.shape), full_spec(b1_p.shape),
            full_spec(w2_p.shape), full_spec(b2_p.shape),
            full_spec(w3_p.shape), full_spec(b3_p.shape),
        ],
        out_specs=full_spec((n_p, f3_p)),
        compiler_params=pltpu.CompilerParams(
            dimension_semantics=("arbitrary",),
            vmem_limit_bytes=vmem_bytes),
        cost_estimate=pl.CostEstimate(flops=flops, transcendentals=0,
                                      bytes_accessed=bytes_accessed),
    )(a_p, x_p, w1_p, b1_p, w2_p, b2_p, w3_p, b3_p)

    return out_p[:n, :f3]


# --------------------------------- main --------------------------------------
if __name__ == "__main__":
    num_nodes = 16
    num_node_features = 8
    num_classes = 4
    num_edges = 32

    key = jax.random.PRNGKey(0)
    k_x, k_e, k_p = jax.random.split(key, 3)

    x = jax.random.normal(k_x, (num_nodes, num_node_features), jnp.float32)
    edge_index = jax.random.randint(k_e, (2, num_edges), 0, num_nodes,
                                    dtype=jnp.int32)

    params = init_gcn_params(k_p, num_node_features, num_classes)

    out = jax.jit(gcn_forward)(params, x, edge_index)
    out = jax.block_until_ready(out)

    # pure-JAX float32 reference of the same forward pass
    a_hat = normalized_adjacency(edge_index, num_nodes)
    h = x
    for i, (w, b) in enumerate(params):
        h = a_hat @ (h @ w) + b
        if i < 2:
            h = jnp.where(h >= 0.0, h, 0.2 * h)

    assert out.shape == (num_nodes, num_classes)
    # matmul operands run in bf16 (f32 accumulation) -> loosened tolerance
    assert jnp.allclose(out, h, atol=5e-2, rtol=5e-2), (
        f"max abs err {jnp.max(jnp.abs(out - h))}")

    print("KERNEL_OK")
</pallas_src>

<mosaic_0001>
module attributes {stable_mosaic.version = 11 : i64} {
  func.func private @main(%arg0: i32) attributes {dimension_semantics = [#tpu.dimension_semantics<core_parallel>], iteration_bounds = array<i64: 2>, tpu.core_type = #tpu.core_type<sc_scalar_subcore>, window_params = []} {
    return
  }
}

module attributes {stable_mosaic.version = 11 : i64} {
  func.func private @main(%arg0: i32) attributes {dimension_semantics = [#tpu.dimension_semantics<core_parallel>], iteration_bounds = array<i64: 2>, tpu.core_type = #tpu.core_type<sc_scalar_subcore>, window_params = []} {
    return
  }
}

module attributes {stable_mosaic.version = 11 : i64} {
  func.func @_gcn_fused_kernel(%arg0: i32, %arg1: memref<128x128xbf16, #tpu.memory_space<vmem>>, %arg2: memref<128x128xbf16, #tpu.memory_space<vmem>>, %arg3: memref<128x128xbf16, #tpu.memory_space<vmem>>, %arg4: memref<1x128xf32, #tpu.memory_space<vmem>>, %arg5: memref<128x128xbf16, #tpu.memory_space<vmem>>, %arg6: memref<1x128xf32, #tpu.memory_space<vmem>>, %arg7: memref<128x128xbf16, #tpu.memory_space<vmem>>, %arg8: memref<1x128xf32, #tpu.memory_space<vmem>>, %arg9: memref<128x128xf32, #tpu.memory_space<vmem>>) attributes {dimension_semantics = [#tpu.dimension_semantics<arbitrary>], iteration_bounds = array<i64: 1>, scalar_prefetch = 0 : i64, scratch_operands = 0 : i64, tpu.core_type = #tpu.core_type<tc>, window_params = [{pipeline_mode = #tpu.pipeline_mode<synchronous>, transform_indices = @transform_0, window_bounds = array<i64: 128, 128>}, {pipeline_mode = #tpu.pipeline_mode<synchronous>, transform_indices = @transform_1, window_bounds = array<i64: 128, 128>}, {pipeline_mode = #tpu.pipeline_mode<synchronous>, transform_indices = @transform_2, window_bounds = array<i64: 128, 128>}, {pipeline_mode = #tpu.pipeline_mode<synchronous>, transform_indices = @transform_3, window_bounds = array<i64: 1, 128>}, {pipeline_mode = #tpu.pipeline_mode<synchronous>, transform_indices = @transform_4, window_bounds = array<i64: 128, 128>}, {pipeline_mode = #tpu.pipeline_mode<synchronous>, transform_indices = @transform_5, window_bounds = array<i64: 1, 128>}, {pipeline_mode = #tpu.pipeline_mode<synchronous>, transform_indices = @transform_6, window_bounds = array<i64: 128, 128>}, {pipeline_mode = #tpu.pipeline_mode<synchronous>, transform_indices = @transform_7, window_bounds = array<i64: 1, 128>}, {pipeline_mode = #tpu.pipeline_mode<synchronous>, transform_indices = @transform_8, window_bounds = array<i64: 128, 128>}]} {
    %c0 = arith.constant 0 : index
    %c0_0 = arith.constant 0 : index
    %0 = vector.load %arg1[%c0, %c0_0] : memref<128x128xbf16, #tpu.memory_space<vmem>>, vector<128x128xbf16>
    %c0_1 = arith.constant 0 : index
    %c0_2 = arith.constant 0 : index
    %1 = vector.load %arg2[%c0_1, %c0_2] : memref<128x128xbf16, #tpu.memory_space<vmem>>, vector<128x128xbf16>
    %cst = arith.constant dense<0.000000e+00> : vector<128x128xf32>
    %2 = tpu.matmul %0, %1, %cst {dimension_numbers = #tpu.dot_dimension_numbers<[1], [0], [0], [1], [0, 0, 1, 1], [], []>} : vector<128x128xbf16>, vector<128x128xbf16>, vector<128x128xf32> -> vector<128x128xf32>
    %3 = arith.truncf %2 : vector<128x128xf32> to vector<128x128xbf16>
    %c0_3 = arith.constant 0 : index
    %c0_4 = arith.constant 0 : index
    %4 = vector.load %arg3[%c0_3, %c0_4] : memref<128x128xbf16, #tpu.memory_space<vmem>>, vector<128x128xbf16>
    %cst_5 = arith.constant dense<0.000000e+00> : vector<128x128xf32>
    %5 = tpu.matmul %3, %4, %cst_5 {dimension_numbers = #tpu.dot_dimension_numbers<[1], [0], [0], [1], [0, 0, 1, 1], [], []>} : vector<128x128xbf16>, vector<128x128xbf16>, vector<128x128xf32> -> vector<128x128xf32>
    %c0_6 = arith.constant 0 : index
    %c0_7 = arith.constant 0 : index
    %6 = vector.load %arg4[%c0_6, %c0_7] : memref<1x128xf32, #tpu.memory_space<vmem>>, vector<1x128xf32>
    %7 = vector.broadcast %6 : vector<1x128xf32> to vector<128x128xf32>
    %8 = arith.addf %5, %7 : vector<128x128xf32>
    %cst_8 = arith.constant 0.000000e+00 : f32
    %9 = vector.broadcast %cst_8 : f32 to vector<128x128xf32>
    %10 = arith.cmpf oge, %8, %9 : vector<128x128xf32>
    %cst_9 = arith.constant 2.000000e-01 : f32
    %11 = vector.broadcast %cst_9 : f32 to vector<128x128xf32>
    %12 = arith.mulf %11, %8 : vector<128x128xf32>
    %13 = arith.select %10, %8, %12 : vector<128x128xi1>, vector<128x128xf32>
    %14 = arith.truncf %13 : vector<128x128xf32> to vector<128x128xbf16>
    %c0_10 = arith.constant 0 : index
    %c0_11 = arith.constant 0 : index
    %15 = vector.load %arg5[%c0_10, %c0_11] : memref<128x128xbf16, #tpu.memory_space<vmem>>, vector<128x128xbf16>
    %cst_12 = arith.constant dense<0.000000e+00> : vector<128x128xf32>
    %16 = tpu.matmul %14, %15, %cst_12 {dimension_numbers = #tpu.dot_dimension_numbers<[1], [0], [0], [1], [0, 0, 1, 1], [], []>} : vector<128x128xbf16>, vector<128x128xbf16>, vector<128x128xf32> -> vector<128x128xf32>
    %17 = arith.truncf %16 : vector<128x128xf32> to vector<128x128xbf16>
    %cst_13 = arith.constant dense<0.000000e+00> : vector<128x128xf32>
    %18 = tpu.matmul %0, %17, %cst_13 {dimension_numbers = #tpu.dot_dimension_numbers<[1], [0], [0], [1], [0, 0, 1, 1], [], []>} : vector<128x128xbf16>, vector<128x128xbf16>, vector<128x128xf32> -> vector<128x128xf32>
    %c0_14 = arith.constant 0 : index
    %c0_15 = arith.constant 0 : index
    %19 = vector.load %arg6[%c0_14, %c0_15] : memref<1x128xf32, #tpu.memory_space<vmem>>, vector<1x128xf32>
    %20 = vector.broadcast %19 : vector<1x128xf32> to vector<128x128xf32>
    %21 = arith.addf %18, %20 : vector<128x128xf32>
    %cst_16 = arith.constant 0.000000e+00 : f32
    %22 = vector.broadcast %cst_16 : f32 to vector<128x128xf32>
    %23 = arith.cmpf oge, %21, %22 : vector<128x128xf32>
    %cst_17 = arith.constant 2.000000e-01 : f32
    %24 = vector.broadcast %cst_17 : f32 to vector<128x128xf32>
    %25 = arith.mulf %24, %21 : vector<128x128xf32>
    %26 = arith.select %23, %21, %25 : vector<128x128xi1>, vector<128x128xf32>
    %27 = arith.truncf %26 : vector<128x128xf32> to vector<128x128xbf16>
    %c0_18 = arith.constant 0 : index
    %c0_19 = arith.constant 0 : index
    %28 = vector.load %arg7[%c0_18, %c0_19] : memref<128x128xbf16, #tpu.memory_space<vmem>>, vector<128x128xbf16>
    %cst_20 = arith.constant dense<0.000000e+00> : vector<128x128xf32>
    %29 = tpu.matmul %27, %28, %cst_20 {dimension_numbers = #tpu.dot_dimension_numbers<[1], [0], [0], [1], [0, 0, 1, 1], [], []>} : vector<128x128xbf16>, vector<128x128xbf16>, vector<128x128xf32> -> vector<128x128xf32>
    %30 = arith.truncf %29 : vector<128x128xf32> to vector<128x128xbf16>
    %cst_21 = arith.constant dense<0.000000e+00> : vector<128x128xf32>
    %31 = tpu.matmul %0, %30, %cst_21 {dimension_numbers = #tpu.dot_dimension_numbers<[1], [0], [0], [1], [0, 0, 1, 1], [], []>} : vector<128x128xbf16>, vector<128x128xbf16>, vector<128x128xf32> -> vector<128x128xf32>
    %c0_22 = arith.constant 0 : index
    %c0_23 = arith.constant 0 : index
    %32 = vector.load %arg8[%c0_22, %c0_23] : memref<1x128xf32, #tpu.memory_space<vmem>>, vector<1x128xf32>
    %33 = vector.broadcast %32 : vector<1x128xf32> to vector<128x128xf32>
    %34 = arith.addf %31, %33 : vector<128x128xf32>
    %c0_24 = arith.constant 0 : index
    %c0_25 = arith.constant 0 : index
    %35 = vector.load %arg9[%c0_24, %c0_25] : memref<128x128xf32, #tpu.memory_space<vmem>>, vector<128x128xf32>
    tpu.vector_store %arg9[%c0_24, %c0_25], %34 {strides = array<i32>} : memref<128x128xf32, #tpu.memory_space<vmem>>, vector<128x128xf32>,
    return
  }
  func.func @transform_0(%arg0: i32) -> (i32, i32) {
    %c0_i32 = arith.constant 0 : i32
    %c0_i32_0 = arith.constant 0 : i32
    %c0_i32_1 = arith.constant 0 : i32
    return %c0_i32, %c0_i32_0 : i32, i32
  }
  func.func @transform_1(%arg0: i32) -> (i32, i32) {
    %c0_i32 = arith.constant 0 : i32
    %c0_i32_0 = arith.constant 0 : i32
    %c0_i32_1 = arith.constant 0 : i32
    return %c0_i32, %c0_i32_0 : i32, i32
  }
  func.func @transform_2(%arg0: i32) -> (i32, i32) {
    %c0_i32 = arith.constant 0 : i32
    %c0_i32_0 = arith.constant 0 : i32
    %c0_i32_1 = arith.constant 0 : i32
    return %c0_i32, %c0_i32_0 : i32, i32
  }
  func.func @transform_3(%arg0: i32) -> (i32, i32) {
    %c0_i32 = arith.constant 0 : i32
    %c0_i32_0 = arith.constant 0 : i32
    %c0_i32_1 = arith.constant 0 : i32
    return %c0_i32, %c0_i32_0 : i32, i32
  }
  func.func @transform_4(%arg0: i32) -> (i32, i32) {
    %c0_i32 = arith.constant 0 : i32
    %c0_i32_0 = arith.constant 0 : i32
    %c0_i32_1 = arith.constant 0 : i32
    return %c0_i32, %c0_i32_0 : i32, i32
  }
  func.func @transform_5(%arg0: i32) -> (i32, i32) {
    %c0_i32 = arith.constant 0 : i32
    %c0_i32_0 = arith.constant 0 : i32
    %c0_i32_1 = arith.constant 0 : i32
    return %c0_i32, %c0_i32_0 : i32, i32
  }
  func.func @transform_6(%arg0: i32) -> (i32, i32) {
    %c0_i32 = arith.constant 0 : i32
    %c0_i32_0 = arith.constant 0 : i32
    %c0_i32_1 = arith.constant 0 : i32
    return %c0_i32, %c0_i32_0 : i32, i32
  }
  func.func @transform_7(%arg0: i32) -> (i32, i32) {
    %c0_i32 = arith.constant 0 : i32
    %c0_i32_0 = arith.constant 0 : i32
    %c0_i32_1 = arith.constant 0 : i32
    return %c0_i32, %c0_i32_0 : i32, i32
  }
  func.func @transform_8(%arg0: i32) -> (i32, i32) {
    %c0_i32 = arith.constant 0 : i32
    %c0_i32_0 = arith.constant 0 : i32
    %c0_i32_1 = arith.constant 0 : i32
    return %c0_i32, %c0_i32_0 : i32, i32
  }
}

</mosaic_0001>

<bundles_post_ra>
// kernel: gcn_forward.1
= control target key start
LH: loop header
LB: loop body
LE: loop exit
PB: predicated region body
PF: predicated region fallthrough
CT: control target
= control target key end

     0   :  { %s1778_s1 = inlined_call_operand.vmem [shape: bf16[128,128], index: 1, kind: input, shape index: {}]   ;;  %s1779_s0 = inlined_call_operand.vmem [shape: bf16[128,128], index: 0, kind: input, shape index: {}]   ;;  %s1780_s2 = inlined_call_operand.vmem [shape: bf16[128,128], index: 2, kind: input, shape index: {}]   ;;  %s1781_s4 = inlined_call_operand.vmem [shape: bf16[128,128], index: 4, kind: input, shape index: {}]   ;;  %s1782_s3 = inlined_call_operand.vmem [shape: f32[1,128], index: 3, kind: input, shape index: {}]   ;;  %s1783_s6 = inlined_call_operand.vmem [shape: bf16[128,128], index: 6, kind: input, shape index: {}]   ;;  %s1784_s5 = inlined_call_operand.vmem [shape: f32[1,128], index: 5, kind: input, shape index: {}]   ;;  %s1785_s7 = inlined_call_operand.vmem [shape: f32[1,128], index: 7, kind: input, shape index: {}]   ;;  %s1786_s8 = inlined_call_operand.vmem [shape: f32[128,128], index: 8, kind: output, shape index: {}]  }
   0x1   :  { %v1440_v0 = vld [vmem:[%s1778_s1] sm:$0xff]   ;;  %v1441_v1 = vld [vmem:[%s1778_s1 + $0x8] sm:$0xff]   ;;  %v1442_v2 = vld [vmem:[%s1778_s1 + $0x10] sm:$0xff]  }
   0x2   :  { %1248 = vmatprep.subr.bf16.mxu0 %v1440_v0  ;;  %v1443_v3 = vld [vmem:[%s1778_s1 + $0x18] sm:$0xff]   ;;  %v1540_v4 = vld [vmem:[%s1779_s0] sm:$0xff]   ;;  %v1445_v6 = vld [vmem:[%s1778_s1 + $0x28] sm:$0xff]  }
   0x3   :  { %1249 = vmatpush3.bf16.msra.mxu0 %v1440_v0  ;;  %1264 = vmatprep.mubr.bf16.mxu0 %v1540_v4  ;;  %v1444_v5 = vld [vmem:[%s1778_s1 + $0x20] sm:$0xff]   ;;  %v1457_v8 = vld [vmem:[%s1780_s2 + $0x8] sm:$0xff]   ;;  %v1446_v9 = vld [vmem:[%s1778_s1 + $0x30] sm:$0xff]  }
   0x4   :  { %1250 = vmatprep.subr.bf16.mxu0 %v1441_v1  ;;  %v1456_v7 = vld [vmem:[%s1780_s2] sm:$0xff]   ;;  %v1458_v10 = vld [vmem:[%s1780_s2 + $0x10] sm:$0xff]   ;;  %v1447_v11 = vld [vmem:[%s1778_s1 + $0x38] sm:$0xff]  }
   0x5   :  { %1280 = vmatprep.subr.bf16.mxu1 %v1456_v7  ;;  %v1459_v12 = vld [vmem:[%s1780_s2 + $0x18] sm:$0xff]   ;;  %v1460_v13 = vld [vmem:[%s1780_s2 + $0x20] sm:$0xff]   ;;  %v1573_v14 = vld [vmem:[%s1779_s0 + $0x8] sm:$0xff]  }
   0x6   :  { %1281 = vmatpush3.bf16.msra.mxu1 %v1456_v7  ;;  %v1578_v15 = vld [vmem:[%s1779_s0 + $0x10] sm:$0xff]   ;;  %v1461_v16 = vld [vmem:[%s1780_s2 + $0x28] sm:$0xff]   ;;  %v1591_v18 = vld [vmem:[%s1779_s0 + $0x18] sm:$0xff]  }
   0x7   :  { %1251 = vmatpush3.bf16.msra.mxu0 %v1441_v1  ;;  %1282 = vmatprep.subr.bf16.mxu1 %v1457_v8  ;;  %v1462_v17 = vld [vmem:[%s1780_s2 + $0x30] sm:$0xff]   ;;  %v1596_v19 = vld [vmem:[%s1779_s0 + $0x20] sm:$0xff]   ;;  %v1603_v20 = vld [vmem:[%s1779_s0 + $0x28] sm:$0xff]  }
   0x8   :  { %1252 = vmatprep.subr.bf16.mxu0 %v1442_v2  ;;  %v1608_v21 = vld [vmem:[%s1779_s0 + $0x30] sm:$0xff]   ;;  %v1615_v22 = vld [vmem:[%s1779_s0 + $0x38] sm:$0xff]   ;;  %v1464_v24 = vld [vmem:[%s1781_s4] sm:$0xff]  }
   0x9   :  { %v1463_v23 = vld [vmem:[%s1780_s2 + $0x38] sm:$0xff]   ;;  %v1465_v25 = vld [vmem:[%s1781_s4 + $0x8] sm:$0xff]   ;;  %v1466_v26 = vld [vmem:[%s1781_s4 + $0x10] sm:$0xff]  }
   0xa   :  { %1283 = vmatpush3.bf16.msra.mxu1 %v1457_v8  ;;  %v1467_v27 = vld [vmem:[%s1781_s4 + $0x18] sm:$0xff]   ;;  %v1468_v28 = vld [vmem:[%s1781_s4 + $0x20] sm:$0xff]   ;;  %v1469_v53 = vld [vmem:[%s1781_s4 + $0x28] sm:$0xff]  }
   0xb   :  { %1253 = vmatpush3.bf16.msra.mxu0 %v1442_v2  ;;  %1284 = vmatprep.subr.bf16.mxu1 %v1458_v10  ;;  %v1470_v54 = vld [vmem:[%s1781_s4 + $0x30] sm:$0xff]   ;;  %v1471_v55 = vld [vmem:[%s1781_s4 + $0x38] sm:$0xff]   ;;  %v1649_v56 = vld [vmem:[%s1782_s3] ss:$0 sm:$0xff] }
   0xc   :  { %1254 = vmatprep.subr.bf16.mxu0 %v1443_v3 }
   0xe   :  { %1285 = vmatpush3.bf16.msra.mxu1 %v1458_v10 }
   0xf   :  { %1255 = vmatpush3.bf16.msra.mxu0 %v1443_v3  ;;  %1286 = vmatprep.subr.bf16.mxu1 %v1459_v12 }
  0x10   :  { %1256 = vmatprep.subr.bf16.mxu0 %v1444_v5 }
  0x12   :  { %1287 = vmatpush3.bf16.msra.mxu1 %v1459_v12 }
  0x13   :  { %1257 = vmatpush3.bf16.msra.mxu0 %v1444_v5  ;;  %1288 = vmatprep.subr.bf16.mxu1 %v1460_v13 }
  0x14   :  { %1258 = vmatprep.subr.bf16.mxu0 %v1445_v6 }
  0x16   :  { %1289 = vmatpush3.bf16.msra.mxu1 %v1460_v13 }
  0x17   :  { %1259 = vmatpush3.bf16.msra.mxu0 %v1445_v6  ;;  %1290 = vmatprep.subr.bf16.mxu1 %v1461_v16 }
  0x18   :  { %1260 = vmatprep.subr.bf16.mxu0 %v1446_v9 }
  0x1a   :  { %1291 = vmatpush3.bf16.msra.mxu1 %v1461_v16 }
  0x1b   :  { %1261 = vmatpush3.bf16.msra.mxu0 %v1446_v9  ;;  %1292 = vmatprep.subr.bf16.mxu1 %v1462_v17 }
  0x1c   :  { %1262 = vmatprep.subr.bf16.mxu0 %v1447_v11 }
  0x1e   :  { %1293 = vmatpush3.bf16.msra.mxu1 %v1462_v17 }
  0x1f   :  { %1263 = vmatpush3.bf16.msra.mxu0 %v1447_v11  ;;  %1294 = vmatprep.subr.bf16.mxu1 %v1463_v23 }
  0x20   :  { %1312 = vmatprep.subr.bf16.mxu0 %v1464_v24 }
  0x22   :  { %1265 = vmatmul.mubr.bf16.vlgmr.msra.gmra.mrb[0].mxu0 %v1573_v14  ;;  %1295 = vmatpush3.bf16.msra.mxu1 %v1463_v23 }
  0x23   :  { %1268 = vmatprep.mubr.bf16.mxu0 %v1578_v15  ;;  %1313 = vmatpush3.bf16.msra.mxu0 %v1464_v24 }
  0x24   :  { %1314 = vmatprep.subr.bf16.mxu0 %v1465_v25 }
  0x27   :  { %1315 = vmatpush3.bf16.msra.mxu0 %v1465_v25 }
  0x28   :  { %1316 = vmatprep.subr.bf16.mxu0 %v1466_v26 }
  0x2a   :  { %1269 = vmatmul.mubr.bf16.gmra.mrb[4].mxu0 %v1591_v18 }
  0x2b   :  { %1272 = vmatprep.mubr.bf16.mxu0 %v1596_v19  ;;  %1317 = vmatpush3.bf16.msra.mxu0 %v1466_v26 }
  0x2c   :  { %1318 = vmatprep.subr.bf16.mxu0 %v1467_v27 }
  0x2f   :  { %1319 = vmatpush3.bf16.msra.mxu0 %v1467_v27 }
  0x30   :  { %1320 = vmatprep.subr.bf16.mxu0 %v1468_v28 }
  0x32   :  { %1273 = vmatmul.mubr.bf16.gmra.mrb[8].mxu0 %v1603_v20 }
  0x33   :  { %1276 = vmatprep.mubr.bf16.mxu0 %v1608_v21  ;;  %1321 = vmatpush3.bf16.msra.mxu0 %v1468_v28 }
  0x34   :  { %1322 = vmatprep.subr.bf16.mxu0 %v1469_v53 }
  0x37   :  { %1323 = vmatpush3.bf16.msra.mxu0 %v1469_v53 }
  0x38   :  { %1324 = vmatprep.subr.bf16.mxu0 %v1470_v54 }
  0x3a   :  { %1277 = vmatmul.mubr.bf16.gmra.mrb[12].mxu0 %v1615_v22 }
  0x3b   :  { %1325 = vmatpush3.bf16.msra.mxu0 %v1470_v54 }
  0x3c   :  { %1326 = vmatprep.subr.bf16.mxu0 %v1471_v55 }
  0x3f   :  { %1327 = vmatpush3.bf16.msra.mxu0 %v1471_v55 }
  0xf5   :  { %v1266_v29 = vpop.f32.mrb[0].mxu0 }
  0xf6   :  { %v192_v30 = vpop.f32.mrb[1].mxu0 }
  0xf7   :  { %v1267_v31 = vpop.f32.mrb[2].mxu0 }
  0xf8   :  { %v256_v32 = vpack.c.bf16 %v1267_v31, %v1266_v29  ;;  %v195_v33 = vpop.f32.mrb[3].mxu0 }
  0xf9   :  { %v255_v34 = vpack.c.bf16 %v195_v33, %v192_v30 }
  0xfb   :  { %1296 = vmatprep.mubr.bf16.mxu1 %v255_v34 }
  0xfc   :  { %1297 = vmatmul.mubr.bf16.vlgmr.msra.gmra.mrb[0].mxu1 %v256_v32 }
  0xfd   :  { %v1270_v35 = vpop.f32.mrb[4].mxu0 }
  0xfe   :  { %v208_v36 = vpop.f32.mrb[5].mxu0 }
  0xff   :  { %v1271_v37 = vpop.f32.mrb[6].mxu0 }
 0x100   :  { %v258_v38 = vpack.c.bf16 %v1271_v37, %v1270_v35  ;;  %v211_v39 = vpop.f32.mrb[7].mxu0 }
 0x101   :  { %v257_v40 = vpack.c.bf16 %v211_v39, %v208_v36 }
 0x103   :  { %1300 = vmatprep.mubr.bf16.mxu1 %v257_v40 }
 0x104   :  { %1301 = vmatmul.mubr.bf16.gmra.mrb[4].mxu1 %v258_v38 }
 0x105   :  { %v1274_v41 = vpop.f32.mrb[8].mxu0 }
 0x106   :  { %v224_v42 = vpop.f32.mrb[9].mxu0 }
 0x107   :  { %v1275_v43 = vpop.f32.mrb[10].mxu0 }
 0x108   :  { %v260_v44 = vpack.c.bf16 %v1275_v43, %v1274_v41  ;;  %v227_v45 = vpop.f32.mrb[11].mxu0 }
 0x109   :  { %v259_v46 = vpack.c.bf16 %v227_v45, %v224_v42 }
 0x10b   :  { %1304 = vmatprep.mubr.bf16.mxu1 %v259_v46 }
 0x10c   :  { %1305 = vmatmul.mubr.bf16.gmra.mrb[8].mxu1 %v260_v44 }
 0x10d   :  { %v1278_v47 = vpop.f32.mrb[12].mxu0 }
 0x10e   :  { %v240_v48 = vpop.f32.mrb[13].mxu0 }
 0x10f   :  { %v1279_v49 = vpop.f32.mrb[14].mxu0 }
 0x110   :  { %v262_v50 = vpack.c.bf16 %v1279_v49, %v1278_v47  ;;  %v243_v51 = vpop.f32.mrb[15].mxu0 }
 0x111   :  { %v261_v52 = vpack.c.bf16 %v243_v51, %v240_v48 }
 0x113   :  { %1308 = vmatprep.mubr.bf16.mxu1 %v261_v52 }
 0x114   :  { %1309 = vmatmul.mubr.bf16.gmra.mrb[12].mxu1 %v262_v50 }
 0x115   :  { %1360 = vmatprep.mubr.bf16.mxu1 %v1540_v4 }
 0x1cf   :  { %v1298_v57 = vpop.f32.mrb[0].mxu1 }
 0x1d0   :  { %v377_v58 = vadd.f32 %v1298_v57, %v1649_v56  ;;  %v368_v59 = vpop.f32.mrb[1].mxu1 }
 0x1d1   :  { %v369_v60 = vadd.f32 %v1649_v56, %v368_v59  ;;  %v1299_v61 = vpop.f32.mrb[2].mxu1 }
 0x1d2   :  { %v449_v62 = vmul.f32 0.2, %v377_v58  ;;  %v380_v63 = vadd.f32 %v1299_v61, %v1649_v56  ;;  %v371_v0 = vpop.f32.mrb[3].mxu1  ;;  %vm433_vm0 = vcmp.ge.f32.partialorder %v377_v58, 0.0 }
 0x1d3   :  { %v447_v1 = vmul.f32 0.2, %v369_v60  ;;  %v372_v2 = vadd.f32 %v1649_v56, %v371_v0  ;;  %vm431_vm1 = vcmp.ge.f32.partialorder %v369_v60, 0.0 }
 0x1d4   :  { %vm434_vm2 = vcmp.ge.f32.partialorder %v380_v63, 0.0  ;;  %v450_v3 = vmul.f32 0.2, %v380_v63  ;;  %v465_v6 = vsel %vm433_vm0, %v377_v58, %v449_v62 }
 0x1d5   :  { %vm432_vm3 = vcmp.ge.f32.partialorder %v372_v2, 0.0  ;;  %v448_v5 = vmul.f32 0.2, %v372_v2  ;;  %v463_v10 = vsel %vm431_vm1, %v369_v60, %v447_v1 }
 0x1d6   :  { %v466_v7 = vsel %vm434_vm2, %v380_v63, %v450_v3 }
 0x1d7   :  { %v480_v8 = vpack.c.bf16 %v466_v7, %v465_v6  ;;  %v1302_v9 = vpop.f32.mrb[4].mxu1  ;;  %v464_v11 = vsel %vm432_vm3, %v372_v2, %v448_v5 }
 0x1d8   :  { %v393_v12 = vadd.f32 %v1302_v9, %v1649_v56  ;;  %v384_v13 = vpop.f32.mrb[5].mxu1  ;;  %v479_v16 = vpack.c.bf16 %v464_v11, %v463_v10  ;;  %v1472_v11 = vld [vmem:[%s1783_s6] sm:$0xff]  }
 0x1d9   :  { %v385_v17 = vadd.f32 %v1649_v56, %v384_v13  ;;  %v1303_v23 = vpop.f32.mrb[6].mxu1  ;;  %1376 = vmatprep.subr.bf16.mxu0 %v1472_v11  ;;  %v1475_v13 = vld [vmem:[%s1783_s6 + $0x18] sm:$0xff]  }
 0x1da   :  { %v453_v24 = vmul.f32 0.2, %v393_v12  ;;  %v396_v25 = vadd.f32 %v1303_v23, %v1649_v56  ;;  %v387_v26 = vpop.f32.mrb[7].mxu1  ;;  %1328 = vmatprep.mubr.bf16.mxu0 %v479_v16  ;;  %vm437_vm4 = vcmp.ge.f32.partialorder %v393_v12, 0.0  ;;  %v1476_v16 = vld [vmem:[%s1783_s6 + $0x20] sm:$0xff]  }
 0x1db   :  { %v451_v27 = vmul.f32 0.2, %v385_v17  ;;  %v388_v28 = vadd.f32 %v1649_v56, %v387_v26  ;;  %1329 = vmatmul.mubr.bf16.vlgmr.msra.gmra.mrb[16].mxu0 %v480_v8  ;;  %vm435_vm5 = vcmp.ge.f32.partialorder %v385_v17, 0.0 }
 0x1dc   :  { %vm438_vm6 = vcmp.ge.f32.partialorder %v396_v25, 0.0  ;;  %v454_v29 = vmul.f32 0.2, %v396_v25  ;;  %v469_v31 = vsel %vm437_vm4, %v393_v12, %v453_v24  ;;  %1377 = vmatpush3.bf16.msra.mxu0 %v1472_v11  ;;  %v1474_v12 = vld [vmem:[%s1783_s6 + $0x10] sm:$0xff]  }
 0x1dd   :  { %vm436_vm7 = vcmp.ge.f32.partialorder %v388_v28, 0.0  ;;  %v452_v30 = vmul.f32 0.2, %v388_v28  ;;  %v467_v34 = vsel %vm435_vm5, %v385_v17, %v451_v27 }
 0x1de   :  { %v470_v32 = vsel %vm438_vm6, %v396_v25, %v454_v29 }
 0x1df   :  { %v1306_v33 = vpop.f32.mrb[8].mxu1  ;;  %v468_v35 = vsel %vm436_vm7, %v388_v28, %v452_v30  ;;  %v482_v36 = vpack.c.bf16 %v470_v32, %v469_v31 }
 0x1e0   :  { %v409_v37 = vadd.f32 %v1306_v33, %v1649_v56  ;;  %v400_v38 = vpop.f32.mrb[9].mxu1  ;;  %v481_v39 = vpack.c.bf16 %v468_v35, %v467_v34 }
 0x1e1   :  { %v401_v40 = vadd.f32 %v1649_v56, %v400_v38  ;;  %v1307_v41 = vpop.f32.mrb[10].mxu1 }
 0x1e2   :  { %v457_v42 = vmul.f32 0.2, %v409_v37  ;;  %v412_v43 = vadd.f32 %v1307_v41, %v1649_v56  ;;  %v403_v44 = vpop.f32.mrb[11].mxu1  ;;  %1332 = vmatprep.mubr.bf16.mxu0 %v481_v39  ;;  %vm441_vm8 = vcmp.ge.f32.partialorder %v409_v37, 0.0 }
 0x1e3   :  { %v455_v45 = vmul.f32 0.2, %v401_v40  ;;  %v404_v46 = vadd.f32 %v1649_v56, %v403_v44  ;;  %1333 = vmatmul.mubr.bf16.gmra.mrb[20].mxu0 %v482_v36  ;;  %vm439_vm9 = vcmp.ge.f32.partialorder %v401_v40, 0.0 }
 0x1e4   :  { %vm442_vm10 = vcmp.ge.f32.partialorder %v412_v43, 0.0  ;;  %v458_v47 = vmul.f32 0.2, %v412_v43  ;;  %v473_v49 = vsel %vm441_vm8, %v409_v37, %v457_v42 }
 0x1e5   :  { %vm440_vm11 = vcmp.ge.f32.partialorder %v404_v46, 0.0  ;;  %v456_v48 = vmul.f32 0.2, %v404_v46  ;;  %v471_v52 = vsel %vm439_vm9, %v401_v40, %v455_v45 }
 0x1e6   :  { %v474_v50 = vsel %vm442_vm10, %v412_v43, %v458_v47  ;;  %v1478_v47 = vld [vmem:[%s1783_s6 + $0x30] sm:$0xff]  }
 0x1e7   :  { %v1310_v51 = vpop.f32.mrb[12].mxu1  ;;  %v472_v53 = vsel %vm440_vm11, %v404_v46, %v456_v48  ;;  %v484_v54 = vpack.c.bf16 %v474_v50, %v473_v49  ;;  %v1477_v46 = vld [vmem:[%s1783_s6 + $0x28] sm:$0xff]   ;;  %v1479_v48 = vld [vmem:[%s1783_s6 + $0x38] sm:$0xff]  }
 0x1e8   :  { %v425_v55 = vadd.f32 %v1310_v51, %v1649_v56  ;;  %v416_v57 = vpop.f32.mrb[13].mxu1  ;;  %v483_v58 = vpack.c.bf16 %v472_v53, %v471_v52 }
 0x1e9   :  { %v417_v59 = vadd.f32 %v1649_v56, %v416_v57  ;;  %v1311_v60 = vpop.f32.mrb[14].mxu1 }
 0x1ea   :  { %v461_v61 = vmul.f32 0.2, %v425_v55  ;;  %v428_v62 = vadd.f32 %v1311_v60, %v1649_v56  ;;  %v419_v63 = vpop.f32.mrb[15].mxu1  ;;  %1336 = vmatprep.mubr.bf16.mxu0 %v483_v58  ;;  %vm445_vm12 = vcmp.ge.f32.partialorder %v425_v55, 0.0 }
 0x1eb   :  { %v459_v0 = vmul.f32 0.2, %v417_v59  ;;  %v420_v1 = vadd.f32 %v1649_v56, %v419_v63  ;;  %1337 = vmatmul.mubr.bf16.gmra.mrb[24].mxu0 %v484_v54  ;;  %vm443_vm13 = vcmp.ge.f32.partialorder %v417_v59, 0.0  ;;  %v1473_v56 = vld [vmem:[%s1783_s6 + $0x8] sm:$0xff]  }
 0x1ec   :  { %vm446_vm14 = vcmp.ge.f32.partialorder %v428_v62, 0.0  ;;  %v462_v2 = vmul.f32 0.2, %v428_v62  ;;  %v477_v5 = vsel %vm445_vm12, %v425_v55, %v461_v61  ;;  %1378 = vmatprep.subr.bf16.mxu0 %v1473_v56 }
 0x1ed   :  { %vm444_vm15 = vcmp.ge.f32.partialorder %v420_v1, 0.0  ;;  %v460_v3 = vmul.f32 0.2, %v420_v1  ;;  %v475_v7 = vsel %vm443_vm13, %v417_v59, %v459_v0  ;;  %1379 = vmatpush3.bf16.msra.mxu0 %v1473_v56 }
 0x1ee   :  { %v478_v6 = vsel %vm446_vm14, %v428_v62, %v462_v2  ;;  %1380 = vmatprep.subr.bf16.mxu0 %v1474_v12 }
 0x1ef   :  { %v476_v8 = vsel %vm444_vm15, %v420_v1, %v460_v3  ;;  %v486_v9 = vpack.c.bf16 %v478_v6, %v477_v5 }
 0x1f0   :  { %v485_v10 = vpack.c.bf16 %v476_v8, %v475_v7 }
 0x1f1   :  { %1381 = vmatpush3.bf16.msra.mxu0 %v1474_v12 }
 0x1f2   :  { %1340 = vmatprep.mubr.bf16.mxu0 %v485_v10  ;;  %1382 = vmatprep.subr.bf16.mxu0 %v1475_v13 }
 0x1f3   :  { %1341 = vmatmul.mubr.bf16.gmra.mrb[28].mxu0 %v486_v9 }
 0x1f5   :  { %1383 = vmatpush3.bf16.msra.mxu0 %v1475_v13 }
 0x1f6   :  { %1384 = vmatprep.subr.bf16.mxu0 %v1476_v16 }
 0x1f9   :  { %1385 = vmatpush3.bf16.msra.mxu0 %v1476_v16 }
 0x1fa   :  { %1386 = vmatprep.subr.bf16.mxu0 %v1477_v46 }
 0x1fd   :  { %1387 = vmatpush3.bf16.msra.mxu0 %v1477_v46 }
 0x1fe   :  { %1388 = vmatprep.subr.bf16.mxu0 %v1478_v47 }
 0x201   :  { %1389 = vmatpush3.bf16.msra.mxu0 %v1478_v47 }
 0x202   :  { %1390 = vmatprep.subr.bf16.mxu0 %v1479_v48 }
 0x205   :  { %1391 = vmatpush3.bf16.msra.mxu0 %v1479_v48 }
 0x2ae   :  { %v1330_v17 = vpop.f32.mrb[16].mxu0 }
 0x2af   :  { %v585_v23 = vpop.f32.mrb[17].mxu0 }
 0x2b0   :  { %v1331_v24 = vpop.f32.mrb[18].mxu0 }
 0x2b1   :  { %v649_v25 = vpack.c.bf16 %v1331_v24, %v1330_v17  ;;  %v588_v26 = vpop.f32.mrb[19].mxu0 }
 0x2b2   :  { %v648_v27 = vpack.c.bf16 %v588_v26, %v585_v23 }
 0x2b4   :  { %1344 = vmatprep.subr.bf16.mxu1 %v648_v27 }
 0x2b5   :  { %1345 = vmatpush3.bf16.msra.mxu1 %v648_v27 }
 0x2b6   :  { %v1334_v28 = vpop.f32.mrb[20].mxu0  ;;  %1346 = vmatprep.subr.bf16.mxu1 %v649_v25 }
 0x2b7   :  { %v601_v29 = vpop.f32.mrb[21].mxu0 }
 0x2b8   :  { %v1335_v30 = vpop.f32.mrb[22].mxu0 }
 0x2b9   :  { %v651_v31 = vpack.c.bf16 %v1335_v30, %v1334_v28  ;;  %v604_v32 = vpop.f32.mrb[23].mxu0  ;;  %1347 = vmatpush3.bf16.msra.mxu1 %v649_v25 }
 0x2ba   :  { %v650_v33 = vpack.c.bf16 %v604_v32, %v601_v29 }
 0x2bc   :  { %1348 = vmatprep.subr.bf16.mxu1 %v650_v33 }
 0x2bd   :  { %1349 = vmatpush3.bf16.msra.mxu1 %v650_v33 }
 0x2be   :  { %v1338_v34 = vpop.f32.mrb[24].mxu0  ;;  %1350 = vmatprep.subr.bf16.mxu1 %v651_v31 }
 0x2bf   :  { %v617_v35 = vpop.f32.mrb[25].mxu0 }
 0x2c0   :  { %v1339_v36 = vpop.f32.mrb[26].mxu0 }
 0x2c1   :  { %v653_v37 = vpack.c.bf16 %v1339_v36, %v1338_v34  ;;  %v620_v38 = vpop.f32.mrb[27].mxu0  ;;  %1351 = vmatpush3.bf16.msra.mxu1 %v651_v31 }
 0x2c2   :  { %v652_v39 = vpack.c.bf16 %v620_v38, %v617_v35 }
 0x2c4   :  { %1352 = vmatprep.subr.bf16.mxu1 %v652_v39 }
 0x2c5   :  { %1353 = vmatpush3.bf16.msra.mxu1 %v652_v39 }
 0x2c6   :  { %v1342_v40 = vpop.f32.mrb[28].mxu0  ;;  %1354 = vmatprep.subr.bf16.mxu1 %v653_v37 }
 0x2c7   :  { %v633_v41 = vpop.f32.mrb[29].mxu0 }
 0x2c8   :  { %v1343_v42 = vpop.f32.mrb[30].mxu0 }
 0x2c9   :  { %v655_v43 = vpack.c.bf16 %v1343_v42, %v1342_v40  ;;  %v636_v44 = vpop.f32.mrb[31].mxu0  ;;  %1355 = vmatpush3.bf16.msra.mxu1 %v653_v37 }
 0x2ca   :  { %v654_v45 = vpack.c.bf16 %v636_v44, %v633_v41 }
 0x2cc   :  { %1356 = vmatprep.subr.bf16.mxu1 %v654_v45 }
 0x2cd   :  { %1357 = vmatpush3.bf16.msra.mxu1 %v654_v45 }
 0x2ce   :  { %1358 = vmatprep.subr.bf16.mxu1 %v655_v43 }
 0x2d1   :  { %1359 = vmatpush3.bf16.msra.mxu1 %v655_v43 }
 0x2d4   :  { %1361 = vmatmul.mubr.bf16.vlgmr.msra.gmra.mrb[16].mxu1 %v1573_v14 }
 0x2d5   :  { %1364 = vmatprep.mubr.bf16.mxu1 %v1578_v15 }
 0x2dc   :  { %1365 = vmatmul.mubr.bf16.gmra.mrb[20].mxu1 %v1591_v18 }
 0x2dd   :  { %1368 = vmatprep.mubr.bf16.mxu1 %v1596_v19 }
 0x2e4   :  { %1369 = vmatmul.mubr.bf16.gmra.mrb[24].mxu1 %v1603_v20 }
 0x2e5   :  { %1372 = vmatprep.mubr.bf16.mxu1 %v1608_v21 }
 0x2ec   :  { %1373 = vmatmul.mubr.bf16.gmra.mrb[28].mxu1 %v1615_v22 }
 0x2ed   :  { %1424 = vmatprep.mubr.bf16.mxu1 %v1540_v4  ;;  %v1702_v4 = vld [vmem:[%s1784_s5] ss:$0 sm:$0xff] }
 0x3a7   :  { %v1362_v49 = vpop.f32.mrb[16].mxu1 }
 0x3a8   :  { %v706_v50 = vadd.f32 %v1362_v49, %v1702_v4  ;;  %v697_v51 = vpop.f32.mrb[17].mxu1 }
 0x3a9   :  { %v698_v52 = vadd.f32 %v1702_v4, %v697_v51  ;;  %v1363_v53 = vpop.f32.mrb[18].mxu1 }
 0x3aa   :  { %v778_v54 = vmul.f32 0.2, %v706_v50  ;;  %v709_v55 = vadd.f32 %v1363_v53, %v1702_v4  ;;  %v700_v57 = vpop.f32.mrb[19].mxu1  ;;  %vm762_vm0 = vcmp.ge.f32.partialorder %v706_v50, 0.0 }
 0x3ab   :  { %v776_v58 = vmul.f32 0.2, %v698_v52  ;;  %v701_v59 = vadd.f32 %v1702_v4, %v700_v57  ;;  %vm760_vm1 = vcmp.ge.f32.partialorder %v698_v52, 0.0 }
 0x3ac   :  { %vm763_vm2 = vcmp.ge.f32.partialorder %v709_v55, 0.0  ;;  %v779_v60 = vmul.f32 0.2, %v709_v55  ;;  %v794_v62 = vsel %vm762_vm0, %v706_v50, %v778_v54 }
 0x3ad   :  { %vm761_vm3 = vcmp.ge.f32.partialorder %v701_v59, 0.0  ;;  %v777_v61 = vmul.f32 0.2, %v701_v59  ;;  %v792_v2 = vsel %vm760_vm1, %v698_v52, %v776_v58 }
 0x3ae   :  { %v795_v63 = vsel %vm763_vm2, %v709_v55, %v779_v60 }
 0x3af   :  { %v809_v0 = vpack.c.bf16 %v795_v63, %v794_v62  ;;  %v1366_v1 = vpop.f32.mrb[20].mxu1  ;;  %v793_v3 = vsel %vm761_vm3, %v701_v59, %v777_v61 }
 0x3b0   :  { %v722_v5 = vadd.f32 %v1366_v1, %v1702_v4  ;;  %v713_v6 = vpop.f32.mrb[21].mxu1  ;;  %v808_v7 = vpack.c.bf16 %v793_v3, %v792_v2 }
 0x3b1   :  { %v714_v8 = vadd.f32 %v1702_v4, %v713_v6  ;;  %v1367_v9 = vpop.f32.mrb[22].mxu1 }
 0x3b2   :  { %v782_v10 = vmul.f32 0.2, %v722_v5  ;;  %v725_v11 = vadd.f32 %v1367_v9, %v1702_v4  ;;  %v716_v56 = vpop.f32.mrb[23].mxu1  ;;  %1392 = vmatprep.mubr.bf16.mxu0 %v808_v7  ;;  %vm766_vm4 = vcmp.ge.f32.partialorder %v722_v5, 0.0 }
 0x3b3   :  { %v780_v12 = vmul.f32 0.2, %v714_v8  ;;  %v717_v13 = vadd.f32 %v1702_v4, %v716_v56  ;;  %1393 = vmatmul.mubr.bf16.vlgmr.msra.gmra.mrb[32].mxu0 %v809_v0  ;;  %vm764_vm5 = vcmp.ge.f32.partialorder %v714_v8, 0.0 }
 0x3b4   :  { %vm767_vm6 = vcmp.ge.f32.partialorder %v725_v11, 0.0  ;;  %v783_v16 = vmul.f32 0.2, %v725_v11  ;;  %v798_v23 = vsel %vm766_vm4, %v722_v5, %v782_v10 }
 0x3b5   :  { %vm765_vm7 = vcmp.ge.f32.partialorder %v717_v13, 0.0  ;;  %v781_v17 = vmul.f32 0.2, %v717_v13  ;;  %v796_v26 = vsel %vm764_vm5, %v714_v8, %v780_v12 }
 0x3b6   :  { %v799_v24 = vsel %vm767_vm6, %v725_v11, %v783_v16 }
 0x3b7   :  { %v1370_v25 = vpop.f32.mrb[24].mxu1  ;;  %v797_v27 = vsel %vm765_vm7, %v717_v13, %v781_v17  ;;  %v811_v28 = vpack.c.bf16 %v799_v24, %v798_v23 }
 0x3b8   :  { %v738_v29 = vadd.f32 %v1370_v25, %v1702_v4  ;;  %v729_v30 = vpop.f32.mrb[25].mxu1  ;;  %v810_v31 = vpack.c.bf16 %v797_v27, %v796_v26 }
 0x3b9   :  { %v730_v32 = vadd.f32 %v1702_v4, %v729_v30  ;;  %v1371_v33 = vpop.f32.mrb[26].mxu1 }
 0x3ba   :  { %v786_v34 = vmul.f32 0.2, %v738_v29  ;;  %v741_v35 = vadd.f32 %v1371_v33, %v1702_v4  ;;  %v732_v36 = vpop.f32.mrb[27].mxu1  ;;  %1396 = vmatprep.mubr.bf16.mxu0 %v810_v31  ;;  %vm770_vm8 = vcmp.ge.f32.partialorder %v738_v29, 0.0 }
 0x3bb   :  { %v784_v37 = vmul.f32 0.2, %v730_v32  ;;  %v733_v38 = vadd.f32 %v1702_v4, %v732_v36  ;;  %1397 = vmatmul.mubr.bf16.gmra.mrb[36].mxu0 %v811_v28  ;;  %vm768_vm9 = vcmp.ge.f32.partialorder %v730_v32, 0.0 }
 0x3bc   :  { %vm771_vm10 = vcmp.ge.f32.partialorder %v741_v35, 0.0  ;;  %v787_v39 = vmul.f32 0.2, %v741_v35  ;;  %v802_v41 = vsel %vm770_vm8, %v738_v29, %v786_v34 }
 0x3bd   :  { %vm769_vm11 = vcmp.ge.f32.partialorder %v733_v38, 0.0  ;;  %v785_v40 = vmul.f32 0.2, %v733_v38  ;;  %v800_v44 = vsel %vm768_vm9, %v730_v32, %v784_v37  ;;  %v1151_v32 = vld [vmem:[%s1785_s7] ss:$0 sm:$0xff] }
 0x3be   :  { %v803_v42 = vsel %vm771_vm10, %v741_v35, %v787_v39 }
 0x3bf   :  { %v1374_v43 = vpop.f32.mrb[28].mxu1  ;;  %v801_v45 = vsel %vm769_vm11, %v733_v38, %v785_v40  ;;  %v813_v46 = vpack.c.bf16 %v803_v42, %v802_v41 }
 0x3c0   :  { %v754_v47 = vadd.f32 %v1374_v43, %v1702_v4  ;;  %v745_v48 = vpop.f32.mrb[29].mxu1  ;;  %v812_v49 = vpack.c.bf16 %v801_v45, %v800_v44 }
 0x3c1   :  { %v746_v50 = vadd.f32 %v1702_v4, %v745_v48  ;;  %v1375_v51 = vpop.f32.mrb[30].mxu1 }
 0x3c2   :  { %v790_v52 = vmul.f32 0.2, %v754_v47  ;;  %v757_v53 = vadd.f32 %v1375_v51, %v1702_v4  ;;  %v748_v54 = vpop.f32.mrb[31].mxu1  ;;  %1400 = vmatprep.mubr.bf16.mxu0 %v812_v49  ;;  %vm774_vm12 = vcmp.ge.f32.partialorder %v754_v47, 0.0 }
 0x3c3   :  { %v788_v55 = vmul.f32 0.2, %v746_v50  ;;  %v749_v57 = vadd.f32 %v1702_v4, %v748_v54  ;;  %1401 = vmatmul.mubr.bf16.gmra.mrb[40].mxu0 %v813_v46  ;;  %vm772_vm13 = vcmp.ge.f32.partialorder %v746_v50, 0.0 }
 0x3c4   :  { %vm775_vm14 = vcmp.ge.f32.partialorder %v757_v53, 0.0  ;;  %v791_v58 = vmul.f32 0.2, %v757_v53  ;;  %v806_v60 = vsel %vm774_vm12, %v754_v47, %v790_v52 }
 0x3c5   :  { %vm773_vm15 = vcmp.ge.f32.partialorder %v749_v57, 0.0  ;;  %v789_v59 = vmul.f32 0.2, %v749_v57  ;;  %v804_v62 = vsel %vm772_vm13, %v746_v50, %v788_v55 }
 0x3c6   :  { %v807_v61 = vsel %vm775_vm14, %v757_v53, %v791_v58 }
 0x3c7   :  { %v805_v63 = vsel %vm773_vm15, %v749_v57, %v789_v59  ;;  %v815_v0 = vpack.c.bf16 %v807_v61, %v806_v60 }
 0x3c8   :  { %v814_v1 = vpack.c.bf16 %v805_v63, %v804_v62 }
 0x3ca   :  { %1404 = vmatprep.mubr.bf16.mxu0 %v814_v1 }
 0x3cb   :  { %1405 = vmatmul.mubr.bf16.gmra.mrb[44].mxu0 %v815_v0 }
 0x486   :  { %v1394_v2 = vpop.f32.mrb[32].mxu0 }
 0x487   :  { %v914_v3 = vpop.f32.mrb[33].mxu0 }
 0x488   :  { %v1395_v5 = vpop.f32.mrb[34].mxu0 }
 0x489   :  { %v978_v6 = vpack.c.bf16 %v1395_v5, %v1394_v2  ;;  %v917_v7 = vpop.f32.mrb[35].mxu0 }
 0x48a   :  { %v977_v4 = vpack.c.bf16 %v917_v7, %v914_v3 }
 0x48c   :  { %1408 = vmatprep.subr.bf16.mxu1 %v977_v4 }
 0x48d   :  { %1409 = vmatpush3.bf16.msra.mxu1 %v977_v4 }
 0x48e   :  { %v1398_v8 = vpop.f32.mrb[36].mxu0  ;;  %1410 = vmatprep.subr.bf16.mxu1 %v978_v6 }
 0x48f   :  { %v930_v9 = vpop.f32.mrb[37].mxu0 }
 0x490   :  { %v1399_v10 = vpop.f32.mrb[38].mxu0 }
 0x491   :  { %v980_v11 = vpack.c.bf16 %v1399_v10, %v1398_v8  ;;  %v933_v56 = vpop.f32.mrb[39].mxu0  ;;  %1411 = vmatpush3.bf16.msra.mxu1 %v978_v6 }
 0x492   :  { %v979_v12 = vpack.c.bf16 %v933_v56, %v930_v9 }
 0x494   :  { %1412 = vmatprep.subr.bf16.mxu1 %v979_v12 }
 0x495   :  { %1413 = vmatpush3.bf16.msra.mxu1 %v979_v12 }
 0x496   :  { %v1402_v13 = vpop.f32.mrb[40].mxu0  ;;  %1414 = vmatprep.subr.bf16.mxu1 %v980_v11 }
 0x497   :  { %v946_v16 = vpop.f32.mrb[41].mxu0 }
 0x498   :  { %v1403_v17 = vpop.f32.mrb[42].mxu0 }
 0x499   :  { %v982_v23 = vpack.c.bf16 %v1403_v17, %v1402_v13  ;;  %v949_v24 = vpop.f32.mrb[43].mxu0  ;;  %1415 = vmatpush3.bf16.msra.mxu1 %v980_v11 }
 0x49a   :  { %v981_v25 = vpack.c.bf16 %v949_v24, %v946_v16 }
 0x49c   :  { %1416 = vmatprep.subr.bf16.mxu1 %v981_v25 }
 0x49d   :  { %1417 = vmatpush3.bf16.msra.mxu1 %v981_v25 }
 0x49e   :  { %v1406_v26 = vpop.f32.mrb[44].mxu0  ;;  %1418 = vmatprep.subr.bf16.mxu1 %v982_v23 }
 0x49f   :  { %v962_v27 = vpop.f32.mrb[45].mxu0 }
 0x4a0   :  { %v1407_v28 = vpop.f32.mrb[46].mxu0 }
 0x4a1   :  { %v984_v29 = vpack.c.bf16 %v1407_v28, %v1406_v26  ;;  %v965_v30 = vpop.f32.mrb[47].mxu0  ;;  %1419 = vmatpush3.bf16.msra.mxu1 %v982_v23 }
 0x4a2   :  { %v983_v31 = vpack.c.bf16 %v965_v30, %v962_v27 }
 0x4a4   :  { %1420 = vmatprep.subr.bf16.mxu1 %v983_v31 }
 0x4a5   :  { %1421 = vmatpush3.bf16.msra.mxu1 %v983_v31 }
 0x4a6   :  { %1422 = vmatprep.subr.bf16.mxu1 %v984_v29 }
 0x4a9   :  { %1423 = vmatpush3.bf16.msra.mxu1 %v984_v29 }
 0x4ac   :  { %1425 = vmatmul.mubr.bf16.vlgmr.msra.gmra.mrb[32].mxu1 %v1573_v14 }
 0x4ad   :  { %1428 = vmatprep.mubr.bf16.mxu1 %v1578_v15 }
 0x4b4   :  { %1429 = vmatmul.mubr.bf16.gmra.mrb[36].mxu1 %v1591_v18 }
 0x4b5   :  { %1432 = vmatprep.mubr.bf16.mxu1 %v1596_v19 }
 0x4bc   :  { %1433 = vmatmul.mubr.bf16.gmra.mrb[40].mxu1 %v1603_v20 }
 0x4bd   :  { %1436 = vmatprep.mubr.bf16.mxu1 %v1608_v21 }
 0x4c4   :  { %1437 = vmatmul.mubr.bf16.gmra.mrb[44].mxu1 %v1615_v22 }
 0x57f   :  { %v1426_v33 = vpop.f32.mrb[32].mxu1 }
 0x580   :  { %v1035_v34 = vadd.f32 %v1426_v33, %v1151_v32  ;;  %v1026_v35 = vpop.f32.mrb[33].mxu1 }
 0x581   :  { %v1027_v14 = vadd.f32 %v1151_v32, %v1026_v35  ;;  %v1427_v36 = vpop.f32.mrb[34].mxu1 }
 0x582   :  { %1091 = vst [vmem:[%s1786_s8 + $0x10] sm:$0xff] %v1035_v34  ;;  %v1038_v15 = vadd.f32 %v1427_v36, %v1151_v32  ;;  %v1029_v18 = vpop.f32.mrb[35].mxu1 }
 0x583   :  { %1089 = vst [vmem:[%s1786_s8] sm:$0xff] %v1027_v14  ;;  %v1030_v19 = vadd.f32 %v1151_v32, %v1029_v18 }
 0x584   :  { %1092 = vst [vmem:[%s1786_s8 + $0x18] sm:$0xff] %v1038_v15 }
 0x585   :  { %1090 = vst [vmem:[%s1786_s8 + $0x8] sm:$0xff] %v1030_v19 }
 0x587   :  { %v1430_v20 = vpop.f32.mrb[36].mxu1 }
 0x588   :  { %v1051_v21 = vadd.f32 %v1430_v20, %v1151_v32  ;;  %v1042_v22 = vpop.f32.mrb[37].mxu1 }
 0x589   :  { %v1043_v37 = vadd.f32 %v1151_v32, %v1042_v22  ;;  %v1431_v38 = vpop.f32.mrb[38].mxu1 }
 0x58a   :  { %1095 = vst [vmem:[%s1786_s8 + $0x30] sm:$0xff] %v1051_v21  ;;  %v1054_v39 = vadd.f32 %v1431_v38, %v1151_v32  ;;  %v1045_v40 = vpop.f32.mrb[39].mxu1 }
 0x58b   :  { %1093 = vst [vmem:[%s1786_s8 + $0x20] sm:$0xff] %v1043_v37  ;;  %v1046_v41 = vadd.f32 %v1151_v32, %v1045_v40 }
 0x58c   :  { %1096 = vst [vmem:[%s1786_s8 + $0x38] sm:$0xff] %v1054_v39 }
 0x58d   :  { %1094 = vst [vmem:[%s1786_s8 + $0x28] sm:$0xff] %v1046_v41 }
 0x58f   :  { %v1434_v42 = vpop.f32.mrb[40].mxu1 }
 0x590   :  { %v1067_v43 = vadd.f32 %v1434_v42, %v1151_v32  ;;  %v1058_v44 = vpop.f32.mrb[41].mxu1 }
 0x591   :  { %v1059_v45 = vadd.f32 %v1151_v32, %v1058_v44  ;;  %v1435_v46 = vpop.f32.mrb[42].mxu1 }
 0x592   :  { %1099 = vst [vmem:[%s1786_s8 + $0x50] sm:$0xff] %v1067_v43  ;;  %v1070_v47 = vadd.f32 %v1435_v46, %v1151_v32  ;;  %v1061_v48 = vpop.f32.mrb[43].mxu1 }
 0x593   :  { %1097 = vst [vmem:[%s1786_s8 + $0x40] sm:$0xff] %v1059_v45  ;;  %v1062_v49 = vadd.f32 %v1151_v32, %v1061_v48 }
 0x594   :  { %1100 = vst [vmem:[%s1786_s8 + $0x58] sm:$0xff] %v1070_v47 }
 0x595   :  { %1098 = vst [vmem:[%s1786_s8 + $0x48] sm:$0xff] %v1062_v49 }
 0x597   :  { %v1438_v50 = vpop.f32.mrb[44].mxu1 }
 0x598   :  { %v1083_v51 = vadd.f32 %v1438_v50, %v1151_v32  ;;  %v1074_v52 = vpop.f32.mrb[45].mxu1 }
 0x599   :  { %v1075_v53 = vadd.f32 %v1151_v32, %v1074_v52  ;;  %v1439_v54 = vpop.f32.mrb[46].mxu1 }
 0x59a   :  { %1103 = vst [vmem:[%s1786_s8 + $0x70] sm:$0xff] %v1083_v51  ;;  %v1086_v55 = vadd.f32 %v1439_v54, %v1151_v32  ;;  %v1077_v57 = vpop.f32.mrb[47].mxu1 }
 0x59b   :  { %1101 = vst [vmem:[%s1786_s8 + $0x60] sm:$0xff] %v1075_v53  ;;  %v1078_v58 = vadd.f32 %v1151_v32, %v1077_v57 }
 0x59c   :  { %1104 = vst [vmem:[%s1786_s8 + $0x78] sm:$0xff] %v1086_v55 }
 0x59d   :  { %1102 = vst [vmem:[%s1786_s8 + $0x68] sm:$0xff] %v1078_v58 }

</bundles_post_ra>
